<compile_context>
chip_gen: v7x
topology: tpu7x:2x2x1
jax: 0.10.0
libtpu: 0.0.40
codegen_flags: <defaults>
</compile_context>

<pallas_src>
import jax
import jax.numpy as jnp
import numpy as np
from jax.experimental import pallas as pl
from jax.experimental.pallas import tpu as pltpu

_LANES = 128


# --------------------------------------------------------------------------- #
# True identity forward (what IdentityEncoder.forward actually is).
# --------------------------------------------------------------------------- #
def identity_encoder_forward(obs: jax.Array) -> jax.Array:
    """Pallas-free equivalent of IdentityEncoder.forward(obs): zero HBM traffic."""
    return obs


# --------------------------------------------------------------------------- #
# Materialized-copy variant (only if a fresh buffer is genuinely required).
# --------------------------------------------------------------------------- #
def _identity_kernel(obs_ref, out_ref):
    # Pure pass-through: load the current tile and store it unchanged.
    out_ref[...] = obs_ref[...]


def _vmem_budget():
    """Per-generation (scoped_vmem_limit, per_buffer_tile_bytes)."""
    try:
        physical = pltpu.get_tpu_info().vmem_capacity_bytes
    except Exception:
        physical = 128 * 1024 * 1024  # conservative default (v5e/v6e size)
    # Leave headroom: never ask for more than half of physical, capped at 48 MiB.
    vmem_limit = min(physical // 2, 48 * 1024 * 1024)
    # 4 live buffers (double-buffered input + output) plus headroom.
    tile_bytes = max(2 * 1024 * 1024, vmem_limit // 6)
    return vmem_limit, tile_bytes


def _pick_tile(rows: int, row_bytes: int, tile_bytes: int, align: int) -> int:
    """Largest row-tile <= the VMEM-derived cap; prefer an exact divisor of rows."""
    cap = max(align, (tile_bytes // max(row_bytes, 1)) // align * align)
    if rows <= cap:
        return rows  # full extent always satisfies the (8, 128) rule
    # Prefer a divisor of rows (no remainder grid step / partial block).
    t = cap
    floor = max(align, cap // 2)
    while t >= floor:
        if rows % t == 0:
            return t
        t -= align
    return cap  # remainder block handled by Pallas boundary masking


def _copy_call(x: jax.Array, block_shape, grid, vmem_limit: int,
               bytes_accessed: int) -> jax.Array:
    return pl.pallas_call(
        _identity_kernel,
        out_shape=jax.ShapeDtypeStruct(x.shape, x.dtype),
        grid=grid,
        in_specs=[pl.BlockSpec(block_shape, lambda i: (i, 0))],
        out_specs=pl.BlockSpec(block_shape, lambda i: (i, 0)),
        input_output_aliases={0: 0},
        cost_estimate=pl.CostEstimate(
            flops=0, transcendentals=0, bytes_accessed=bytes_accessed),
        compiler_params=pltpu.CompilerParams(
            dimension_semantics=("parallel",),
            vmem_limit_bytes=vmem_limit,
        ),
    )(x)


def identity_encoder_copy(obs: jax.Array) -> jax.Array:
    """Pallas copy of `obs` (bit-exact).  Wrap with jit(donate_argnums=0) so the
    input/output alias is real; see identity_encoder_copy_donated below."""
    assert obs.ndim == 2, "expected (batch, repr_dim) observations"
    n, d = obs.shape
    total = n * d
    bpe = jnp.dtype(obs.dtype).itemsize
    vmem_limit, tile_bytes = _vmem_budget()
    traffic = 2 * total * bpe  # one HBM read + one HBM write

    if total % _LANES == 0 and total > 0:
        # Lane-dense path: present a (rows, 128) slab so every store is a full
        # 128-lane `vst`, and tile the row axis for DMA pipelining.
        rows = total // _LANES
        flat = obs.reshape(rows, _LANES)
        tile = _pick_tile(rows, _LANES * bpe, tile_bytes, align=32)
        grid = (pl.cdiv(rows, tile),)
        out = _copy_call(flat, (tile, _LANES), grid, vmem_limit, traffic)
        return out.reshape(n, d)

    # Fallback (element count not a multiple of 128): tile the batch axis with
    # (block_n, d) blocks — block_n a multiple of 8 (or full extent), last dim
    # full extent — so this path still pipelines and stays within VMEM.
    tile_n = _pick_tile(n, d * bpe, tile_bytes, align=8)
    grid = (pl.cdiv(n, tile_n),)
    return _copy_call(obs, (tile_n, d), grid, vmem_limit, traffic)


# Donated-copy entry point: the pallas output aliases the (donated) input
# buffer, so exactly one read + one write of HBM and no extra allocation.
identity_encoder_copy_donated = jax.jit(identity_encoder_copy, donate_argnums=0)


if __name__ == "__main__":
    key = jax.random.PRNGKey(0)
    batch, repr_dim = 16, 32  # obs_shape = (32,) -> repr_dim = 32
    obs = jax.random.normal(key, (batch, repr_dim), dtype=jnp.float32)

    # Snapshot before any donating call: after donation the original buffer is gone.
    expected = np.asarray(jax.device_get(obs))

    # 1) The actual IdentityEncoder.forward semantics: zero-cost pass-through.
    out_fast = identity_encoder_forward(obs)
    assert out_fast is obs

    # 2) Pallas materialized-copy kernel (lane-dense path), with real donation.
    out = identity_encoder_copy_donated(obs)
    out = jax.block_until_ready(out)
    assert out.shape == expected.shape
    assert out.dtype == expected.dtype
    assert np.array_equal(np.asarray(jax.device_get(out)), expected)

    # 3) Exercise the lane-misaligned fallback path (now tiled, not whole-array).
    obs2 = jax.random.normal(jax.random.PRNGKey(1), (5, 7), dtype=jnp.float32)
    expected2 = np.asarray(jax.device_get(obs2))
    out2 = jax.block_until_ready(identity_encoder_copy(obs2))
    assert np.array_equal(np.asarray(jax.device_get(out2)), expected2)

    print("KERNEL_OK")
</pallas_src>

<mosaic_0001>
module attributes {stable_mosaic.version = 11 : i64} {
  func.func @_identity_kernel(%arg0: i32, %arg1: memref<4x128xf32, #tpu.memory_space<vmem>>, %arg2: memref<4x128xf32, #tpu.memory_space<vmem>>) attributes {dimension_semantics = [#tpu.dimension_semantics<parallel>], iteration_bounds = array<i64: 1>, scalar_prefetch = 0 : i64, scratch_operands = 0 : i64, tpu.core_type = #tpu.core_type<tc>, window_params = [{transform_indices = @transform_0, window_bounds = array<i64: 4, 128>}, {transform_indices = @transform_1, window_bounds = array<i64: 4, 128>}]} {
    %c0 = arith.constant 0 : index
    %c0_0 = arith.constant 0 : index
    %0 = vector.load %arg1[%c0, %c0_0] : memref<4x128xf32, #tpu.memory_space<vmem>>, vector<4x128xf32>
    %c0_1 = arith.constant 0 : index
    %c0_2 = arith.constant 0 : index
    %1 = vector.load %arg2[%c0_1, %c0_2] : memref<4x128xf32, #tpu.memory_space<vmem>>, vector<4x128xf32>
    tpu.vector_store %arg2[%c0_1, %c0_2], %0 {strides = array<i32>} : memref<4x128xf32, #tpu.memory_space<vmem>>, vector<4x128xf32>,
    return
  }
  func.func @transform_0(%arg0: i32) -> (i32, i32) {
    %c0_i32 = arith.constant 0 : i32
    %c0_i32_0 = arith.constant 0 : i32
    return %arg0, %c0_i32 : i32, i32
  }
  func.func @transform_1(%arg0: i32) -> (i32, i32) {
    %c0_i32 = arith.constant 0 : i32
    %c0_i32_0 = arith.constant 0 : i32
    return %arg0, %c0_i32 : i32, i32
  }
}

</mosaic_0001>

<bundles_post_ra>
// kernel: identity_encoder_copy.1
= control target key start
LH: loop header
LB: loop body
LE: loop exit
PB: predicated region body
PF: predicated region fallthrough
CT: control target
= control target key end

     0   :  { %s30_s0 = inlined_call_operand.vmem [shape: f32[4,128], index: 0, kind: input, shape index: {}, may-alias: {0,1}]   ;;  %s31_s1 = inlined_call_operand.vmem [shape: f32[4,128], index: 1, kind: output, shape index: {}, may-alias: {0,1}]  }
   0x1   :  { %v8_v0 = vld [vmem:[%s30_s0] sm:$0xf] }
   0x2   :  { %9 = vst [vmem:[%s31_s1] sm:$0xf] %v8_v0 }

</bundles_post_ra>
